<compile_context>
chip_gen: v5e
topology: v5e:2x2
jax: 0.10.0
libtpu: 0.0.40
codegen_flags: <defaults>
</compile_context>

<pallas_src>
import jax
import jax.numpy as jnp
from jax.experimental import pallas as pl
from jax.experimental.pallas import tpu as pltpu

N_STATES = 110          # one-hot vocabulary size (fixed by the module)
N_COND = 3              # desired_return (2) + desired_horizon (1)
N_HIDDEN = 64
N_IN_PAD = 128          # 110 one-hot lanes + 3 condition lanes + 15 zero lanes
NEG_BIG = -1e30         # bias pad value -> padded logits drop out of softmax


def _round_up(x, m):
    return ((x + m - 1) // m) * m


def _dst_kernel(state_ref, c_ref, w1_ref, b1_ref, wf_ref, bf_ref, out_ref):
    tb = state_ref.shape[0]
    nh = wf_ref.shape[0]                                   # hidden width (64)

    # ---- fused (tb, 128) input: [one-hot(state) | c | zero pad] ----------
    idx = state_ref[...]                                   # (tb, 1) int32
    col = jax.lax.broadcasted_iota(jnp.int32, (tb, N_IN_PAD), 1)
    x = jnp.where((col == idx) & (col < N_STATES), 1.0, 0.0)
    c = c_ref[...]                                         # (tb, 3) f32
    x = x + jnp.where(col == N_STATES + 0, c[:, 0:1], 0.0)
    x = x + jnp.where(col == N_STATES + 1, c[:, 1:2], 0.0)
    x = x + jnp.where(col == N_STATES + 2, c[:, 2:3], 0.0)

    # ---- one block-diagonal MXU pass + one (tb,128) sigmoid --------------
    act = jnp.dot(x, w1_ref[...], preferred_element_type=jnp.float32)
    act = jax.nn.sigmoid(act + b1_ref[...])                # (tb, 128)

    # ---- gate: s_emb (cols 0..63) * c_emb (cols 64..127) -----------------
    h = act[:, :nh] * act[:, nh:]                          # (tb, 64)

    # ---- lane-dense logits (128 cols) + masked-free log-softmax ----------
    logits = jnp.dot(h, wf_ref[...], preferred_element_type=jnp.float32)
    logits = logits + bf_ref[...]                          # pad lanes ~ -1e30
    m = jnp.max(logits, axis=1, keepdims=True)
    shifted = logits - m
    lse = jnp.log(jnp.sum(jnp.exp(shifted), axis=1, keepdims=True))
    out_ref[...] = shifted - lse                           # (tb, 128)


def dst_model_forward(state, desired_return, desired_horizon, params,
                      scaling_factor, *, block_b=512):
    """state: (B,) int; desired_return: (B,2) f32; desired_horizon: (B,1) f32."""
    B = state.shape[0]
    nh = params["ws"].shape[1]
    nA = params["wf"].shape[1]
    nA_pad = max(128, _round_up(nA, 128))
    n_wide = 2 * nh                                        # 128 for nh=64

    # ---- pack weights: block-diagonal embedding weight, scale folded in ---
    scale = jnp.asarray(scaling_factor, jnp.float32).reshape(N_COND)
    w1 = jnp.zeros((N_IN_PAD, n_wide), jnp.float32)
    w1 = w1.at[:N_STATES, :nh].set(params["ws"].astype(jnp.float32))
    w1 = w1.at[N_STATES:N_STATES + N_COND, nh:].set(
        scale[:, None] * params["wc"].astype(jnp.float32))
    b1 = jnp.concatenate([params["bs"].reshape(1, nh),
                          params["bc"].reshape(1, nh)], axis=1)      # (1,128)

    wf = jnp.zeros((nh, nA_pad), jnp.float32).at[:, :nA].set(
        params["wf"].astype(jnp.float32))
    bf = jnp.full((1, nA_pad), NEG_BIG, jnp.float32).at[:, :nA].set(
        params["bf"].reshape(1, nA).astype(jnp.float32))

    # ---- glue: condition concat, batch padding to a multiple of the tile --
    c = jnp.concatenate([desired_return.astype(jnp.float32),
                         desired_horizon.astype(jnp.float32)], axis=-1)
    state_idx = state.astype(jnp.int32).reshape(B, 1)

    tb = min(block_b, _round_up(B, 8))
    B_pad = _round_up(B, tb)
    if B_pad != B:
        c = jnp.pad(c, ((0, B_pad - B), (0, 0)))
        state_idx = jnp.pad(state_idx, ((0, B_pad - B), (0, 0)))

    grid = (B_pad // tb,)
    out = pl.pallas_call(
        _dst_kernel,
        out_shape=jax.ShapeDtypeStruct((B_pad, nA_pad), jnp.float32),
        grid_spec=pltpu.PrefetchScalarGridSpec(
            num_scalar_prefetch=0,
            grid=grid,
            in_specs=[
                pl.BlockSpec((tb, 1), lambda i: (i, 0)),          # state idx
                pl.BlockSpec((tb, N_COND), lambda i: (i, 0)),     # condition
                pl.BlockSpec((N_IN_PAD, n_wide), lambda i: (0, 0)),  # W1 resident
                pl.BlockSpec((1, n_wide), lambda i: (0, 0)),         # b1 resident
                pl.BlockSpec((nh, nA_pad), lambda i: (0, 0)),        # Wf resident
                pl.BlockSpec((1, nA_pad), lambda i: (0, 0)),         # bf resident
            ],
            out_specs=pl.BlockSpec((tb, nA_pad), lambda i: (i, 0)),
        ),
        compiler_params=pltpu.CompilerParams(
            dimension_semantics=("parallel",)),
    )(state_idx, c, w1, b1, wf, bf)

    return out[:B, :nA]


def init_params(key, nA, n_hidden=N_HIDDEN):
    """Deterministic PyTorch-Linear-style init; weights stored [in, out]."""
    ks = jax.random.split(key, 6)

    def lin(kw, kb, fan_in, fan_out):
        bound = 1.0 / jnp.sqrt(fan_in)
        w = jax.random.uniform(kw, (fan_in, fan_out), jnp.float32,
                               -bound, bound)
        b = jax.random.uniform(kb, (1, fan_out), jnp.float32, -bound, bound)
        return w, b

    ws, bs = lin(ks[0], ks[1], N_STATES, n_hidden)
    wc, bc = lin(ks[2], ks[3], N_COND, n_hidden)
    wf, bf = lin(ks[4], ks[5], n_hidden, nA)
    return {"ws": ws, "bs": bs, "wc": wc, "bc": bc, "wf": wf, "bf": bf}


def _reference_forward(state, desired_return, desired_horizon, params, scale):
    """Pure-JAX reference for correctness checking."""
    c = jnp.concatenate([desired_return, desired_horizon], axis=-1)
    c = c * jnp.asarray(scale, jnp.float32).reshape(1, N_COND)
    one_hot = jax.nn.one_hot(state.astype(jnp.int32), N_STATES,
                             dtype=jnp.float32)
    s = jax.nn.sigmoid(one_hot @ params["ws"] + params["bs"])
    ce = jax.nn.sigmoid(c @ params["wc"] + params["bc"])
    logits = (s * ce) @ params["wf"] + params["bf"]
    return jax.nn.log_softmax(logits, axis=1)


if __name__ == "__main__":
    key = jax.random.PRNGKey(0)
    k_param, k_state, k_ret, k_hor = jax.random.split(key, 4)

    B = 8
    nA = 4
    scaling_factor = jnp.array([0.1, 0.1, 0.01], dtype=jnp.float32)
    params = init_params(k_param, nA)

    state = jax.random.randint(k_state, (B,), 0, N_STATES, dtype=jnp.int32)
    desired_return = jax.random.uniform(k_ret, (B, 2), jnp.float32, 0.0, 20.0)
    desired_horizon = jax.random.uniform(k_hor, (B, 1), jnp.float32, 1.0, 50.0)

    out = dst_model_forward(state, desired_return, desired_horizon,
                            params, scaling_factor)
    out = jax.block_until_ready(out)
    ref = _reference_forward(state, desired_return, desired_horizon,
                             params, scaling_factor)
    assert out.shape == (B, nA)
    assert jnp.allclose(out, ref, atol=1e-5, rtol=1e-5), (
        "mismatch vs pure-JAX reference (B=8)")
    assert jnp.allclose(jnp.sum(jnp.exp(out), axis=1), 1.0, atol=1e-5)

    # Exercise the multi-tile grid + batch-padding path (grid > 1).
    B2 = 200
    k2s, k2r, k2h = jax.random.split(jax.random.PRNGKey(1), 3)
    state2 = jax.random.randint(k2s, (B2,), 0, N_STATES, dtype=jnp.int32)
    dr2 = jax.random.uniform(k2r, (B2, 2), jnp.float32, 0.0, 20.0)
    dh2 = jax.random.uniform(k2h, (B2, 1), jnp.float32, 1.0, 50.0)
    out2 = jax.block_until_ready(
        dst_model_forward(state2, dr2, dh2, params, scaling_factor,
                          block_b=64))
    ref2 = _reference_forward(state2, dr2, dh2, params, scaling_factor)
    assert jnp.allclose(out2, ref2, atol=1e-5, rtol=1e-5), (
        "mismatch vs pure-JAX reference (B=200, tiled)")

    print("KERNEL_OK")
</pallas_src>

<mosaic_0001>
module attributes {stable_mosaic.version = 11 : i64} {
  func.func @_dst_kernel(%arg0: i32, %arg1: memref<8x1xi32, #tpu.memory_space<vmem>>, %arg2: memref<8x3xf32, #tpu.memory_space<vmem>>, %arg3: memref<128x128xf32, #tpu.memory_space<vmem>>, %arg4: memref<1x128xf32, #tpu.memory_space<vmem>>, %arg5: memref<64x128xf32, #tpu.memory_space<vmem>>, %arg6: memref<1x128xf32, #tpu.memory_space<vmem>>, %arg7: memref<8x128xf32, #tpu.memory_space<vmem>>) attributes {dimension_semantics = [#tpu.dimension_semantics<parallel>], iteration_bounds = array<i64: 1>, scalar_prefetch = 0 : i64, scratch_operands = 0 : i64, tpu.core_type = #tpu.core_type<tc>, window_params = [{transform_indices = @transform_0, window_bounds = array<i64: 8, 1>}, {transform_indices = @transform_1, window_bounds = array<i64: 8, 3>}, {pipeline_mode = #tpu.pipeline_mode<synchronous>, transform_indices = @transform_2, window_bounds = array<i64: 128, 128>}, {pipeline_mode = #tpu.pipeline_mode<synchronous>, transform_indices = @transform_3, window_bounds = array<i64: 1, 128>}, {pipeline_mode = #tpu.pipeline_mode<synchronous>, transform_indices = @transform_4, window_bounds = array<i64: 64, 128>}, {pipeline_mode = #tpu.pipeline_mode<synchronous>, transform_indices = @transform_5, window_bounds = array<i64: 1, 128>}, {transform_indices = @transform_6, window_bounds = array<i64: 8, 128>}]} {
    %c0 = arith.constant 0 : index
    %c0_0 = arith.constant 0 : index
    %0 = vector.load %arg1[%c0, %c0_0] : memref<8x1xi32, #tpu.memory_space<vmem>>, vector<8x1xi32>
    %1 = tpu.iota {dimensions = array<i32: 1>} : vector<8x128xi32>
    %2 = vector.broadcast %0 : vector<8x1xi32> to vector<8x128xi32>
    %3 = arith.cmpi eq, %1, %2 : vector<8x128xi32>
    %c110_i32 = arith.constant 110 : i32
    %4 = vector.broadcast %c110_i32 : i32 to vector<8x128xi32>
    %5 = arith.cmpi slt, %1, %4 : vector<8x128xi32>
    %6 = arith.andi %3, %5 : vector<8x128xi1>
    %cst = arith.constant 1.000000e+00 : f32
    %cst_1 = arith.constant 0.000000e+00 : f32
    %7 = vector.broadcast %cst : f32 to vector<8x128xf32>
    %8 = vector.broadcast %cst_1 : f32 to vector<8x128xf32>
    %9 = arith.select %6, %7, %8 : vector<8x128xi1>, vector<8x128xf32>
    %c0_2 = arith.constant 0 : index
    %c0_3 = arith.constant 0 : index
    %10 = vector.load %arg2[%c0_2, %c0_3] : memref<8x3xf32, #tpu.memory_space<vmem>>, vector<8x3xf32>
    %c110_i32_4 = arith.constant 110 : i32
    %11 = vector.broadcast %c110_i32_4 : i32 to vector<8x128xi32>
    %12 = arith.cmpi eq, %1, %11 : vector<8x128xi32>
    %13 = vector.extract_strided_slice %10 {offsets = [0, 0], sizes = [8, 1], strides = [1, 1]} : vector<8x3xf32> to vector<8x1xf32>
    %cst_5 = arith.constant 0.000000e+00 : f32
    %14 = vector.shape_cast %13 : vector<8x1xf32> to vector<8x1xf32>
    %15 = vector.broadcast %14 : vector<8x1xf32> to vector<8x128xf32>
    %16 = vector.broadcast %cst_5 : f32 to vector<8x128xf32>
    %17 = arith.select %12, %15, %16 : vector<8x128xi1>, vector<8x128xf32>
    %18 = arith.addf %9, %17 : vector<8x128xf32>
    %c111_i32 = arith.constant 111 : i32
    %19 = vector.broadcast %c111_i32 : i32 to vector<8x128xi32>
    %20 = arith.cmpi eq, %1, %19 : vector<8x128xi32>
    %21 = vector.extract_strided_slice %10 {offsets = [0, 1], sizes = [8, 1], strides = [1, 1]} : vector<8x3xf32> to vector<8x1xf32>
    %cst_6 = arith.constant 0.000000e+00 : f32
    %22 = vector.shape_cast %21 : vector<8x1xf32> to vector<8x1xf32>
    %23 = vector.broadcast %22 : vector<8x1xf32> to vector<8x128xf32>
    %24 = vector.broadcast %cst_6 : f32 to vector<8x128xf32>
    %25 = arith.select %20, %23, %24 : vector<8x128xi1>, vector<8x128xf32>
    %26 = arith.addf %18, %25 : vector<8x128xf32>
    %c112_i32 = arith.constant 112 : i32
    %27 = vector.broadcast %c112_i32 : i32 to vector<8x128xi32>
    %28 = arith.cmpi eq, %1, %27 : vector<8x128xi32>
    %29 = vector.extract_strided_slice %10 {offsets = [0, 2], sizes = [8, 1], strides = [1, 1]} : vector<8x3xf32> to vector<8x1xf32>
    %cst_7 = arith.constant 0.000000e+00 : f32
    %30 = vector.shape_cast %29 : vector<8x1xf32> to vector<8x1xf32>
    %31 = vector.broadcast %30 : vector<8x1xf32> to vector<8x128xf32>
    %32 = vector.broadcast %cst_7 : f32 to vector<8x128xf32>
    %33 = arith.select %28, %31, %32 : vector<8x128xi1>, vector<8x128xf32>
    %34 = arith.addf %26, %33 : vector<8x128xf32>
    %c0_8 = arith.constant 0 : index
    %c0_9 = arith.constant 0 : index
    %35 = vector.load %arg3[%c0_8, %c0_9] : memref<128x128xf32, #tpu.memory_space<vmem>>, vector<128x128xf32>
    %cst_10 = arith.constant dense<0.000000e+00> : vector<8x128xf32>
    %36 = tpu.matmul %34, %35, %cst_10 {dimension_numbers = #tpu.dot_dimension_numbers<[1], [0], [0], [1], [0, 0, 1, 1], [], []>} : vector<8x128xf32>, vector<128x128xf32>, vector<8x128xf32> -> vector<8x128xf32>
    %c0_11 = arith.constant 0 : index
    %c0_12 = arith.constant 0 : index
    %37 = vector.load %arg4[%c0_11, %c0_12] : memref<1x128xf32, #tpu.memory_space<vmem>>, vector<1x128xf32>
    %38 = vector.broadcast %37 : vector<1x128xf32> to vector<8x128xf32>
    %39 = arith.addf %36, %38 : vector<8x128xf32>
    %40 = arith.negf %39 : vector<8x128xf32>
    %41 = math.exp %40 : vector<8x128xf32>
    %cst_13 = arith.constant 1.000000e+00 : f32
    %42 = vector.broadcast %cst_13 : f32 to vector<8x128xf32>
    %43 = arith.addf %42, %41 : vector<8x128xf32>
    %44 = arith.divf %42, %43 : vector<8x128xf32>
    %45 = vector.extract_strided_slice %44 {offsets = [0, 0], sizes = [8, 64], strides = [1, 1]} : vector<8x128xf32> to vector<8x64xf32>
    %46 = vector.extract_strided_slice %44 {offsets = [0, 64], sizes = [8, 64], strides = [1, 1]} : vector<8x128xf32> to vector<8x64xf32>
    %47 = arith.mulf %45, %46 : vector<8x64xf32>
    %c0_14 = arith.constant 0 : index
    %c0_15 = arith.constant 0 : index
    %48 = vector.load %arg5[%c0_14, %c0_15] : memref<64x128xf32, #tpu.memory_space<vmem>>, vector<64x128xf32>
    %cst_16 = arith.constant dense<0.000000e+00> : vector<8x128xf32>
    %49 = tpu.matmul %47, %48, %cst_16 {dimension_numbers = #tpu.dot_dimension_numbers<[1], [0], [0], [1], [0, 0, 1, 1], [], []>} : vector<8x64xf32>, vector<64x128xf32>, vector<8x128xf32> -> vector<8x128xf32>
    %c0_17 = arith.constant 0 : index
    %c0_18 = arith.constant 0 : index
    %50 = vector.load %arg6[%c0_17, %c0_18] : memref<1x128xf32, #tpu.memory_space<vmem>>, vector<1x128xf32>
    %51 = vector.broadcast %50 : vector<1x128xf32> to vector<8x128xf32>
    %52 = arith.addf %49, %51 : vector<8x128xf32>
    %cst_19 = arith.constant dense<0xFF800000> : vector<8xf32>
    %53 = vector.multi_reduction <maximumf>, %52, %cst_19 [1] : vector<8x128xf32> to vector<8xf32>
    %54 = vector.shape_cast %53 : vector<8xf32> to vector<8x1xf32>
    %55 = vector.broadcast %54 : vector<8x1xf32> to vector<8x128xf32>
    %56 = arith.subf %52, %55 : vector<8x128xf32>
    %57 = math.exp %56 : vector<8x128xf32>
    %cst_20 = arith.constant dense<0.000000e+00> : vector<8xf32>
    %58 = vector.multi_reduction <add>, %57, %cst_20 [1] : vector<8x128xf32> to vector<8xf32>
    %59 = vector.shape_cast %58 : vector<8xf32> to vector<8x1xf32>
    %60 = math.log %59 : vector<8x1xf32>
    %61 = vector.broadcast %60 : vector<8x1xf32> to vector<8x128xf32>
    %62 = arith.subf %56, %61 : vector<8x128xf32>
    %c0_21 = arith.constant 0 : index
    %c0_22 = arith.constant 0 : index
    %63 = vector.load %arg7[%c0_21, %c0_22] : memref<8x128xf32, #tpu.memory_space<vmem>>, vector<8x128xf32>
    tpu.vector_store %arg7[%c0_21, %c0_22], %62 {strides = array<i32>} : memref<8x128xf32, #tpu.memory_space<vmem>>, vector<8x128xf32>,
    return
  }
  func.func @transform_0(%arg0: i32) -> (i32, i32) {
    %c0_i32 = arith.constant 0 : i32
    %c0_i32_0 = arith.constant 0 : i32
    return %arg0, %c0_i32 : i32, i32
  }
  func.func @transform_1(%arg0: i32) -> (i32, i32) {
    %c0_i32 = arith.constant 0 : i32
    %c0_i32_0 = arith.constant 0 : i32
    return %arg0, %c0_i32 : i32, i32
  }
  func.func @transform_2(%arg0: i32) -> (i32, i32) {
    %c0_i32 = arith.constant 0 : i32
    %c0_i32_0 = arith.constant 0 : i32
    %c0_i32_1 = arith.constant 0 : i32
    return %c0_i32, %c0_i32_0 : i32, i32
  }
  func.func @transform_3(%arg0: i32) -> (i32, i32) {
    %c0_i32 = arith.constant 0 : i32
    %c0_i32_0 = arith.constant 0 : i32
    %c0_i32_1 = arith.constant 0 : i32
    return %c0_i32, %c0_i32_0 : i32, i32
  }
  func.func @transform_4(%arg0: i32) -> (i32, i32) {
    %c0_i32 = arith.constant 0 : i32
    %c0_i32_0 = arith.constant 0 : i32
    %c0_i32_1 = arith.constant 0 : i32
    return %c0_i32, %c0_i32_0 : i32, i32
  }
  func.func @transform_5(%arg0: i32) -> (i32, i32) {
    %c0_i32 = arith.constant 0 : i32
    %c0_i32_0 = arith.constant 0 : i32
    %c0_i32_1 = arith.constant 0 : i32
    return %c0_i32, %c0_i32_0 : i32, i32
  }
  func.func @transform_6(%arg0: i32) -> (i32, i32) {
    %c0_i32 = arith.constant 0 : i32
    %c0_i32_0 = arith.constant 0 : i32
    return %arg0, %c0_i32 : i32, i32
  }
}

</mosaic_0001>

<bundles_post_ra>
// kernel: tpu_custom_call.1
= control target key start
LH: loop header
LB: loop body
LE: loop exit
PB: predicated region body
PF: predicated region fallthrough
CT: control target
= control target key end

     0   :  { %11 = vsyncpa [#allocation3], 0  ;;  %s388_s0 = inlined_call_operand.vmem [shape: s32[8,1], index: 0, kind: input, shape index: {}]   ;;  %s389_s1 = inlined_call_operand.vmem [shape: f32[8,3], index: 1, kind: input, shape index: {}]   ;;  %s390_s2 = inlined_call_operand.hbm [shape: f32[128,128], index: 2, kind: input, shape index: {}]   ;;  %s391_s3 = inlined_call_operand.vmem [shape: f32[1,128], index: 3, kind: input, shape index: {}]   ;;  %s392_s4 = inlined_call_operand.hbm [shape: f32[64,128], index: 4, kind: input, shape index: {}]   ;;  %s393_s5 = inlined_call_operand.vmem [shape: f32[1,128], index: 5, kind: input, shape index: {}]   ;;  %s394_s6 = inlined_call_operand.hbm [shape: f32[8,128], index: 6, kind: output, shape index: {}]  }
   0x1   :  { %12 = vsyncpa [#allocation6], 0 }
   0x2   :  { %13 = vsyncpa [#allocation4], 0  ;;  %s22_s23 = sshll.u32 %s390_s2, 4  ;;  %s322_s24 = smov [#allocation2]   ;;  %s23_s23 = int_to_ptr.hbm [resolvable:$true] %s22_s23 }
   0x3   :  { %s24_s25 = sshll.u32 %s322_s24, 4  ;;  %s37_s28 = sshll.u32 %s392_s4, 4  ;;  %s25_s25 = int_to_ptr.vmem [resolvable:$true] %s24_s25  ;;  %s38_s28 = int_to_ptr.hbm [resolvable:$true] %s37_s28 }
   0x4   :  { %s323_s29 = smov 128   ;;  %s324_s30 = smov 8  }
   0x5   :  { %30 = dma.hbm_to_vmem [thread:$0]  %s23_s23, 2048, %s25_s25, [#allocation3], %s323_s29, %s323_s29, %s324_s30  }
   0x6   :  { %s325_s7 = smov [#allocation5]  }
   0x7   :  { %s39_s8 = sshll.u32 %s325_s7, 4  ;;  %s40_s8 = int_to_ptr.vmem [resolvable:$true] %s39_s8 }
   0x8   :  { %45 = dma.hbm_to_vmem [thread:$0]  %s38_s28, 1024, %s40_s8, [#allocation6], %s323_s29, %s323_s29, %s324_s30  }
   0x9   :  { %316 = dma.done.wait [#allocation3], 2048  }
   0xa   :  { %317 = vsyncadd [#allocation3], 4294965248 }
   0xb   :  { %318 = dma.done.wait [#allocation6], 1024  }
   0xc   :  { %319 = vsyncadd [#allocation6], 4294966272  ;;  %v326_v0 = vmov 0   ;;  %v327_v1 = vmov 1   ;;  %v56_v2 = vld [vmem:[%s388_s0] sm:$0xff]  ;;  %v104_v4 = vld [vmem:[#allocation2 + $0x78] sm:$0xff]  ;;  %v57_v21 = vlaneseq }
   0xd   :  { %230 = vset.pattern.permute.xlu0 %v326_v0  ;;  %231 = vset.pattern.permute.xlu1 %v327_v1  ;;  %v66_v3 = vld [vmem:[%s389_s1] sm:$0xff]  ;;  %v103_v5 = vld [vmem:[#allocation2 + $0x70] sm:$0xff]  ;;  %v102_v6 = vld [vmem:[#allocation2 + $0x68] sm:$0xff]  ;;  %v328_v9 = vmov 2   ;;  %v329_v26 = vmov 0.0   ;;  %vm165_vm10 = vcmask 523264  }
   0xe   :  { %60 = vperm.xlu0 %230, %v56_v2   ;;  %77 = vperm.xlu1 %231, %v66_v3   ;;  %v101_v7 = vld [vmem:[#allocation2 + $0x60] sm:$0xff]  ;;  %v100_v8 = vld [vmem:[#allocation2 + $0x58] sm:$0xff]  ;;  %v99_v10 = vld [vmem:[#allocation2 + $0x50] sm:$0xff]  ;;  %v58_v22 = vand.u32 127, %v57_v21  ;;  %s331_s13 = smov [#allocation7]   ;;  %s207_s17 = sshll.u32 %s394_s6, 4  ;;  %s208_s17 = int_to_ptr.hbm [resolvable:$true] %s207_s17 }
   0xf   :  { %109 = vmatpush.msra.mxu0 %v104_v4  ;;  %v98_v11 = vld [vmem:[#allocation2 + $0x48] sm:$0xff]  ;;  %v97_v12 = vld [vmem:[#allocation2 + $0x40] sm:$0xff]  ;;  %v96_v13 = vld [vmem:[#allocation2 + $0x38] sm:$0xff]  ;;  %s205_s14 = sshll.u32 %s331_s13, 4  ;;  %s206_s14 = int_to_ptr.vmem [resolvable:$true] %s205_s14 }
  0x10   :  { %v95_v14 = vld [vmem:[#allocation2 + $0x30] sm:$0xff]  ;;  %v94_v15 = vld [vmem:[#allocation2 + $0x28] sm:$0xff]  ;;  %v93_v16 = vld [vmem:[#allocation2 + $0x20] sm:$0xff]  ;;  %vm63_vm0 = vcmp.lt.s32.totalorder %v58_v22, 110  ;;  %vm67_vm3 = vcmp.eq.s32.totalorder %v58_v22, 110  ;;  %vm75_vm4 = vcmp.eq.s32.totalorder %v58_v22, 111 }
  0x11   :  { %110 = vmatpush.msra.mxu0 %v103_v5  ;;  %v92_v17 = vld [vmem:[#allocation2 + $0x18] sm:$0xff]  ;;  %v91_v18 = vld [vmem:[#allocation2 + $0x10] sm:$0xff]  ;;  %v90_v19 = vld [vmem:[#allocation2 + $0x8] sm:$0xff]  ;;  %vm82_vm5 = vcmp.eq.s32.totalorder %v58_v22, 112 }
  0x12   :  { %v89_v20 = vld [vmem:[#allocation2] sm:$0xff]  ;;  %v160_v36 = vld [vmem:[#allocation5 + $0x38] sm:$0xff]  ;;  %v159_v37 = vld [vmem:[#allocation5 + $0x30] sm:$0xff] }
  0x13   :  { %111 = vmatpush.msra.mxu0 %v102_v6  ;;  %v234_v35 = vld [vmem:[%s391_s3] ss:$0 sm:$0xff]  ;;  %177 = vmatpush.msra.mxu1 %v160_v36  ;;  %v158_v40 = vld [vmem:[#allocation5 + $0x28] sm:$0xff]  ;;  %v156_v43 = vld [vmem:[#allocation5 + $0x18] sm:$0xff]  ;;  %s330_s3 = smov 64  }
  0x14   :  { %v157_v42 = vld [vmem:[#allocation5 + $0x20] sm:$0xff]  ;;  %v155_v44 = vld [vmem:[#allocation5 + $0x10] sm:$0xff]  ;;  %v154_v45 = vld [vmem:[#allocation5 + $0x8] sm:$0xff] }
  0x15   :  { %112 = vmatpush.msra.mxu0 %v101_v7  ;;  %178 = vmatpush.msra.mxu1 %v159_v37  ;;  %v153_v58 = vld [vmem:[#allocation5] sm:$0xff] }
  0x16   :  { %70 = vperm.xlu0 %230, %v66_v3   ;;  %232 = vset.pattern.permute.xlu1 %v328_v9  ;;  %v235_v61 = vld [vmem:[%s393_s5] ss:$0 sm:$0xff] }
  0x17   :  { %84 = vperm.xlu1 %232, %v66_v3   ;;  %113 = vmatpush.msra.mxu0 %v100_v8 }
  0x18   :  { %179 = vmatpush.msra.mxu1 %v158_v40 }
  0x19   :  { %114 = vmatpush.msra.mxu0 %v99_v10 }
  0x1a   :  { %180 = vmatpush.msra.mxu1 %v157_v42 }
  0x1b   :  { %115 = vmatpush.msra.mxu0 %v98_v11 }
  0x1c   :  { %181 = vmatpush.msra.mxu1 %v156_v43 }
  0x1d   :  { %116 = vmatpush.msra.mxu0 %v97_v12 }
  0x1e   :  { %233 = vset.pattern.permute.xlu0 %v328_v9  ;;  %182 = vmatpush.msra.mxu1 %v155_v44 }
  0x1f   :  { %117 = vmatpush.msra.mxu0 %v96_v13 }
  0x20   :  { %183 = vmatpush.msra.mxu1 %v154_v45 }
  0x21   :  { %118 = vmatpush.msra.mxu0 %v95_v14 }
  0x22   :  { %184 = vmatpush.msra.mxu1 %v153_v58 }
  0x23   :  { %119 = vmatpush.msra.mxu0 %v94_v15 }
  0x25   :  { %120 = vmatpush.msra.mxu0 %v93_v16 }
  0x27   :  { %121 = vmatpush.msra.mxu0 %v92_v17 }
  0x29   :  { %122 = vmatpush.msra.mxu0 %v91_v18 }
  0x2b   :  { %123 = vmatpush.msra.mxu0 %v90_v19 }
  0x2d   :  { %124 = vmatpush.msra.mxu0 %v89_v20 }
  0x80   :  { %v61_v23 = vpop.permute.xlu0 %60  ;;  %v78_v24 = vpop.permute.xlu1 %77 }
  0x81   :  { %vm62_vm1 = vcmp.eq.s32.totalorder %v58_v22, %v61_v23  ;;  %v80_v31 = vsel %vm75_vm4, %v78_v24, 0.0 }
  0x82   :  { %vm64_vm2 = vmand %vm62_vm1, %vm63_vm0 }
  0x83   :  { %v65_v27 = vsel %vm64_vm2, 1.0, %v329_v26 }
  0x88   :  { %v71_v25 = vpop.permute.xlu0 %70 }
  0x89   :  { %v73_v28 = vsel %vm67_vm3, %v71_v25, 0.0  ;;  %v85_v29 = vpop.permute.xlu1 %84 }
  0x8a   :  { %v74_v30 = vadd.f32 %v73_v28, %v65_v27  ;;  %v87_v32 = vsel %vm82_vm5, %v85_v29, 0.0 }
  0x8c   :  { %v81_v33 = vadd.f32 %v80_v31, %v74_v30 }
  0x8e   :  { %v88_v34 = vadd.f32 %v87_v32, %v81_v33 }
  0x90   :  { %125 = vmatmul.f32.vlgmr.msra.gmra.mxu0 %v88_v34 }
 0x10d   :  { %v126_v38 = vpop.f32.mrf.mxu0 }
 0x10e   :  { %v127_v39 = vadd.f32 %v234_v35, %v126_v38 }
 0x110   :  { %v218_v41 = vmul.f32 -1.442695, %v127_v39 }
 0x112   :  { %236 = vpow2.f32 %v218_v41 }
 0x118   :  { %v237_v46 = vpop.eup %236 }
 0x119   :  { %v132_v47 = vadd.f32 1.0, %v237_v46 }
 0x11b   :  { %238 = vrcp.f32 %v132_v47  ;;  %v144_v51 = vand.u32 2147483648, %v132_v47  ;;  %v142_v53 = vand.u32 2147483647, %v132_v47  ;;  %vm138_vm7 = vweird.f32 %v132_v47 }
 0x11d   :  { %v145_v55 = vor.u32 1.1754944e-38, %v144_v51  ;;  %vm143_vm9 = vcmp.eq.f32.partialorder %v142_v53, 8.507059e+37 }
 0x121   :  { %v239_v48 = vpop.eup %238 }
 0x122   :  { %v134_v49 = vmul.f32 %v239_v48, %v132_v47  ;;  %vm139_vm6 = vweird.f32 %v239_v48 }
 0x123   :  { %vm140_vm8 = vmor %vm138_vm7, %vm139_vm6 }
 0x124   :  { %v135_v50 = vsub.f32 1.0, %v134_v49 }
 0x126   :  { %v136_v52 = vmul.f32 %v239_v48, %v135_v50 }
 0x128   :  { %v137_v54 = vadd.f32 %v239_v48, %v136_v52 }
 0x12a   :  { %v141_v56 = vsel %vm140_vm8, %v239_v48, %v137_v54 }
 0x12b   :  { %v146_v57 = vsel %vm143_vm9, %v145_v55, %v141_v56 }
 0x12c   :  { %149 = vrot.lane.b32.xlu2 %v146_v57, %s330_s3 }
 0x186   :  { %v150_v59 = vpop.permute.xlu2 %149 }
 0x187   :  { %v152_v60 = vmul.f32 %v150_v59, %v146_v57 }
 0x189   :  { %219 = vmatmul.msk.f32.vlgmr.msra.gmra.mxu1 %vm165_vm10, %v152_v60 }
 0x206   :  { %v186_v62 = vpop.f32.mrf.mxu1 }
 0x207   :  { %v187_v63 = vadd.f32 %v235_v61, %v186_v62 }
 0x209   :  { %189 = vmax.xlane.f32.xlu2 %v187_v63 }
 0x27c   :  { %v190_v0 = vpop.xlane.xlu2 %189 }
 0x27d   :  { %v191_v1 = vsub.f32 %v187_v63, %v190_v0 }
 0x27f   :  { %v192_v2 = vmul.f32 1.442695, %v191_v1 }
 0x281   :  { %240 = vpow2.f32 %v192_v2 }
 0x287   :  { %v241_v3 = vpop.eup %240 }
 0x288   :  { %194 = vadd.xlane.f32.xlu0 %v241_v3 }
 0x2fb   :  { %v195_v4 = vpop.xlane.xlu0 %194 }
 0x2fc   :  { %242 = vlog2.f32 %v195_v4 }
 0x302   :  { %v243_v5 = vpop.eup %242 }
 0x303   :  { %v197_v6 = vmul.f32 0.6931472, %v243_v5 }
 0x305   :  { %v198_v7 = vsub.f32 %v191_v1, %v197_v6 }
 0x307   :  { %199 = vst [vmem:[#allocation7] sm:$0xff] %v198_v7 }
 0x308   :  { %210 = dma.vmem_to_hbm [thread:$0]  %s206_s14, 128, %s208_s17, [#allocation4]  }
 0x309   :  { %320 = dma.done.wait [#allocation4], 128  }
 0x30a   :  { %321 = vsyncadd [#allocation4], 4294967168 }
 0x30b   :  { %215 = vsyncpa [#allocation3], 1 }
 0x30c   :  { %216 = vsyncpa [#allocation6], 1 }
 0x30d   :  { %217 = vsyncpa [#allocation4], 1 }

</bundles_post_ra>
